<compile_context>
chip_gen: v5e
topology: v5e:2x2
jax: 0.10.0
libtpu: 0.0.40
codegen_flags: <defaults>
</compile_context>

<pallas_src>
import functools

import jax
import jax.numpy as jnp
from jax.experimental import pallas as pl
from jax.experimental.pallas import tpu as pltpu


# ----------------------------------------------------------------------------
# Fused forward kernel
# ----------------------------------------------------------------------------
def _fused_forward_kernel(x_ref, a_ref, pool_ref, w32_ref, w2_ref, b_ref,
                          out_ref, emb_ref, *, n_layers, hidden, offs):
    """Entire SkipLastGNN forward (eval mode) on VMEM-resident whole-array blocks.

    emb_ref: (N, (n_layers+1)*H) VMEM scratch = the skip concat, lane-dense.
    w32_ref: packed 32-col weights (static row offsets in `offs`).
    w2_ref:  post_mp Linear2 weight (H, 256).
    b_ref:   packed biases; row 0 = post_b2 (256 lanes), rows 1.. = 32-lane biases.
    """
    f32 = jnp.float32
    H = hidden

    a = a_ref[...]                                    # (N, N) loaded once, reused

    # --- pre_mp: Linear(input_dim, H) into the first H lanes of the concat buffer
    emb_ref[...] = jnp.zeros_like(emb_ref)            # zero unwritten lanes once
    o0, o1 = offs["pre"]
    e0 = jnp.dot(x_ref[...], w32_ref[o0:o1, :],
                 preferred_element_type=f32) + b_ref[1:2, 0:H]
    emb_ref[:, 0:H] = e0

    # --- learnable-skip GCN layers: ONE wide-K dot per layer (sigmoid(skip) is
    #     pre-folded into the zero-padded weight rows outside the kernel).
    for i in range(n_layers):
        o0, o1 = offs["conv"][i]
        xw = jnp.dot(emb_ref[...], w32_ref[o0:o1, :], preferred_element_type=f32)
        y = jnp.dot(a, xw, preferred_element_type=f32) + b_ref[2 + i:3 + i, 0:H]
        emb_ref[:, (i + 1) * H:(i + 2) * H] = jnp.maximum(y, 0.0)  # relu; dropout=id

    # --- global_add_pool fused with post_mp Linear0: two lane-dense matmuls
    pooled = jnp.dot(pool_ref[...], emb_ref[...], preferred_element_type=f32)
    rb = 2 + n_layers                                 # first post-mp bias row
    o0, o1 = offs["post0"]
    g = jnp.dot(pooled, w32_ref[o0:o1, :], preferred_element_type=f32) \
        + b_ref[rb:rb + 1, 0:H]
    g = jnp.where(g > 0.0, g, 0.1 * g)                # Dropout(eval)=id, LeakyReLU(0.1)

    o0, o1 = offs["post1"]
    g = jnp.maximum(jnp.dot(g, w32_ref[o0:o1, :], preferred_element_type=f32)
                    + b_ref[rb + 1:rb + 2, 0:H], 0.0)
    c2 = w2_ref.shape[1]
    g = jnp.maximum(jnp.dot(g, w2_ref[...], preferred_element_type=f32)
                    + b_ref[0:1, 0:c2], 0.0)
    o0, o1 = offs["post3"]
    out_ref[...] = jnp.dot(g, w32_ref[o0:o1, :], preferred_element_type=f32) \
        + b_ref[rb + 2:rb + 3, 0:H]


def _vmem_padded_bytes(shape, itemsize=4):
    """Bytes an array occupies in VMEM after (8,128) tile padding."""
    if len(shape) == 1:
        r, c = 1, int(shape[0])
    else:
        r, c = int(shape[-2]), int(shape[-1])
    lead = 1
    for s in shape[:-2]:
        lead *= int(s)
    return lead * (-(-r // 8) * 8) * (-(-c // 128) * 128) * itemsize


def skip_last_gnn_forward(params, x, a_norm, pool_mat, n_layers, hidden_dim):
    """Single fused pallas_call for the whole SkipLastGNN forward (eval mode)."""
    f32 = jnp.float32
    n_nodes, input_dim = x.shape
    num_graphs = pool_mat.shape[0]
    H = hidden_dim
    KW = (n_layers + 1) * H                           # concat width (= 128 here)

    # -- layout glue: pad graph rows / input_dim rows to sublane multiples.
    b_pad = max(8, -(-num_graphs // 8) * 8)
    pool_p = jnp.zeros((b_pad, n_nodes), f32).at[:num_graphs].set(pool_mat.astype(f32))
    id_pad = -(-input_dim // 8) * 8
    x_p = jnp.zeros((n_nodes, id_pad), f32).at[:, :input_dim].set(x.astype(f32))

    # -- fold sigmoid(learnable_skip) into the conv weights once (static weights),
    #    zero-padded to the full concat width so each layer is one K=KW matmul.
    pre_w_p = jnp.zeros((id_pad, H), f32).at[:input_dim].set(params["pre_w"].astype(f32))
    w_eff = []
    for i in range(n_layers):
        s = jax.nn.sigmoid(params["learnable_skip"][i, :i + 1].astype(f32))
        w = jnp.repeat(s, H)[:, None] * params["conv_w"][i].astype(f32)
        w_eff.append(jnp.zeros((KW, H), f32).at[:(i + 1) * H].set(w))

    # -- pack all 32-output-col weights into ONE buffer (static row offsets, all
    #    multiples of 8) and all biases into one buffer: 6 input DMAs total.
    segs = ([("pre", pre_w_p)]
            + [(("conv", i), w_eff[i]) for i in range(n_layers)]
            + [("post0", params["post_w0"].astype(f32)),
               ("post1", params["post_w1"].astype(f32)),
               ("post3", params["post_w3"].astype(f32))])
    offs = {"conv": [None] * n_layers}
    mats, row = [], 0
    for key, m in segs:
        assert m.shape[0] % 8 == 0 and m.shape[1] == H
        if isinstance(key, tuple):
            offs["conv"][key[1]] = (row, row + m.shape[0])
        else:
            offs[key] = (row, row + m.shape[0])
        mats.append(m)
        row += m.shape[0]
    w32_pack = jnp.concatenate(mats, axis=0)

    bcols = max(256, H)
    brows = max(8, -(-(n_layers + 5) // 8) * 8)
    bias_pack = jnp.zeros((brows, bcols), f32)
    bias_pack = bias_pack.at[0, :256].set(params["post_b2"].astype(f32))
    bias_pack = bias_pack.at[1, :H].set(params["pre_b"].astype(f32))
    for i in range(n_layers):
        bias_pack = bias_pack.at[2 + i, :H].set(params["conv_b"][i].astype(f32))
    rb = 2 + n_layers
    bias_pack = bias_pack.at[rb, :H].set(params["post_b0"].astype(f32))
    bias_pack = bias_pack.at[rb + 1, :H].set(params["post_b1"].astype(f32))
    bias_pack = bias_pack.at[rb + 2, :H].set(params["post_b3"].astype(f32))

    post_w2 = params["post_w2"].astype(f32)
    inputs = [x_p, a_norm.astype(f32), pool_p, w32_pack, post_w2, bias_pack]

    # -- VMEM request derived from the actual padded footprint (+ headroom), never
    #    the full physical VMEM of a v7x core.
    needed = sum(_vmem_padded_bytes(v.shape) for v in inputs)
    needed += _vmem_padded_bytes((b_pad, H))          # output
    needed += _vmem_padded_bytes((n_nodes, KW))       # concat scratch
    vmem_limit = int(min(max(2 * needed + (1 << 20), 4 << 20), 48 << 20))

    kern = functools.partial(_fused_forward_kernel,
                             n_layers=n_layers, hidden=H, offs=offs)
    out = pl.pallas_call(
        kern,
        out_shape=jax.ShapeDtypeStruct((b_pad, H), f32),
        in_specs=[pl.BlockSpec(memory_space=pltpu.MemorySpace.VMEM)] * len(inputs),
        out_specs=pl.BlockSpec(memory_space=pltpu.MemorySpace.VMEM),
        scratch_shapes=[pltpu.VMEM((n_nodes, KW), f32)],
        compiler_params=pltpu.CompilerParams(vmem_limit_bytes=vmem_limit),
    )(*inputs)
    # TODO(synk): for N large enough that a_norm stops fitting VMEM, move to a
    # (layer, row-tile) grid (concat scratch kept whole in VMEM) with per-graph
    # block-diagonal adjacency tiles; degenerate (single tile) at this demo size.
    # TODO(synk): cast matmul operands to bf16 (keep f32 accumulation) once the
    # problem scales past toy N; kept f32 here so the numeric check is slack-free.
    return out[:num_graphs]


# ----------------------------------------------------------------------------
# Glue: graph preprocessing + parameters
# ----------------------------------------------------------------------------
def build_norm_adj(edge_index, n_nodes):
    """Dense symmetric GCN normalization: D^-1/2 (A + I) D^-1/2 (one-time glue)."""
    src, dst = edge_index
    a = jnp.zeros((n_nodes, n_nodes), jnp.float32).at[dst, src].add(1.0)
    a = a + jnp.eye(n_nodes, dtype=jnp.float32)
    deg = a.sum(axis=1)
    d_inv_sqrt = jax.lax.rsqrt(deg)
    return d_inv_sqrt[:, None] * a * d_inv_sqrt[None, :]


def glorot(key, shape):
    fan_in, fan_out = shape
    lim = (6.0 / (fan_in + fan_out)) ** 0.5
    return jax.random.uniform(key, shape, jnp.float32, -lim, lim)


def init_params(key, input_dim, hidden_dim, output_dim, n_layers):
    assert output_dim == hidden_dim, "post_mp stack requires output_dim == hidden_dim"
    keys = jax.random.split(key, 16)
    p = {}
    p["pre_w"] = glorot(keys[0], (input_dim, hidden_dim))
    p["pre_b"] = jnp.zeros((hidden_dim,), jnp.float32)
    p["learnable_skip"] = jnp.ones((n_layers, n_layers), jnp.float32)
    p["conv_w"] = [glorot(keys[1 + l], (hidden_dim * (l + 1), hidden_dim))
                   for l in range(n_layers)]
    p["conv_b"] = [jnp.zeros((hidden_dim,), jnp.float32) for _ in range(n_layers)]
    post_in = hidden_dim * (n_layers + 1)
    dims = [(post_in, hidden_dim), (hidden_dim, output_dim), (output_dim, 256),
            (256, hidden_dim)]
    for j, d in enumerate(dims):
        p[f"post_w{j}"] = glorot(keys[8 + j], d)
        p[f"post_b{j}"] = jnp.zeros((d[1],), jnp.float32)
    return p


# ----------------------------------------------------------------------------
# Pure-JAX reference (mirrors SkipLastGNN.forward in eval mode)
# ----------------------------------------------------------------------------
def reference_forward(params, x, a_norm, pool_mat, n_layers, hidden_dim):
    x = x @ params["pre_w"] + params["pre_b"]
    emb = x
    all_emb = x[:, None, :]
    for i in range(n_layers):
        skip_vals = jax.nn.sigmoid(params["learnable_skip"][i, : i + 1])[None, :, None]
        curr = (all_emb * skip_vals).reshape(x.shape[0], -1)
        h = a_norm @ (curr @ params["conv_w"][i]) + params["conv_b"][i]
        h = jnp.maximum(h, 0.0)
        emb = jnp.concatenate([emb, h], axis=1)
        all_emb = jnp.concatenate([all_emb, h[:, None, :]], axis=1)
    pooled = pool_mat @ emb
    g = pooled @ params["post_w0"] + params["post_b0"]
    g = jnp.where(g > 0.0, g, 0.1 * g)
    g = jnp.maximum(g @ params["post_w1"] + params["post_b1"], 0.0)
    g = jnp.maximum(g @ params["post_w2"] + params["post_b2"], 0.0)
    return g @ params["post_w3"] + params["post_b3"]


# ----------------------------------------------------------------------------
# Demo
# ----------------------------------------------------------------------------
if __name__ == "__main__":
    INPUT_DIM = 16
    HIDDEN_DIM = 32
    OUTPUT_DIM = 32      # must equal HIDDEN_DIM (see reference post_mp)
    N_LAYERS = 3
    NODES_PER_GRAPH = 8
    NUM_GRAPHS = 2
    N = NODES_PER_GRAPH * NUM_GRAPHS

    key = jax.random.PRNGKey(0)
    k_feat, k_param = jax.random.split(key)

    node_feature = jax.random.normal(k_feat, (N, INPUT_DIM), jnp.float32)

    batch = jnp.concatenate([jnp.full((NODES_PER_GRAPH,), g, jnp.int32)
                             for g in range(NUM_GRAPHS)])

    # symmetric ring edges inside each graph
    src_list, dst_list = [], []
    for g in range(NUM_GRAPHS):
        base = g * NODES_PER_GRAPH
        for j in range(NODES_PER_GRAPH):
            a = base + j
            b = base + (j + 1) % NODES_PER_GRAPH
            src_list += [a, b]
            dst_list += [b, a]
    edge_index = jnp.array([src_list, dst_list], dtype=jnp.int32)   # (2, 32)

    a_norm = build_norm_adj(edge_index, N)                           # (N, N)
    pool_mat = (batch[None, :] == jnp.arange(NUM_GRAPHS)[:, None]).astype(jnp.float32)

    params = init_params(k_param, INPUT_DIM, HIDDEN_DIM, OUTPUT_DIM, N_LAYERS)

    out = skip_last_gnn_forward(params, node_feature, a_norm, pool_mat,
                                N_LAYERS, HIDDEN_DIM)
    out = jax.block_until_ready(out)

    ref = reference_forward(params, node_feature, a_norm, pool_mat,
                            N_LAYERS, HIDDEN_DIM)
    ref = jax.block_until_ready(ref)

    assert out.shape == (NUM_GRAPHS, HIDDEN_DIM)
    assert bool(jnp.all(jnp.isfinite(out)))
    assert bool(jnp.allclose(out, ref, rtol=5e-2, atol=5e-2)), (
        "pallas output mismatch vs pure-JAX reference")
    # TODO(synk): GAT / PNA / SAGE conv variants and training-mode dropout are not
    # instantiated by this config and are not implemented.
    print("KERNEL_OK")
</pallas_src>

<mosaic_0001>
module attributes {stable_mosaic.version = 11 : i64} {
  func.func @_fused_forward_kernel(%arg0: memref<16x16xf32, #tpu.memory_space<vmem>>, %arg1: memref<16x16xf32, #tpu.memory_space<vmem>>, %arg2: memref<8x16xf32, #tpu.memory_space<vmem>>, %arg3: memref<816x32xf32, #tpu.memory_space<vmem>>, %arg4: memref<32x256xf32, #tpu.memory_space<vmem>>, %arg5: memref<8x256xf32, #tpu.memory_space<vmem>>, %arg6: memref<8x32xf32, #tpu.memory_space<vmem>>, %arg7: memref<16x128xf32, #tpu.memory_space<vmem>>) attributes {dimension_semantics = [], scalar_prefetch = 0 : i64, scratch_operands = 1 : i64, tpu.core_type = #tpu.core_type<tc>} {
    %c0 = arith.constant 0 : index
    %c0_0 = arith.constant 0 : index
    %0 = vector.load %arg1[%c0, %c0_0] : memref<16x16xf32, #tpu.memory_space<vmem>>, vector<16x16xf32>
    %cst = arith.constant 0.000000e+00 : f32
    %1 = vector.broadcast %cst : f32 to vector<16x128xf32>
    %c0_1 = arith.constant 0 : index
    %c0_2 = arith.constant 0 : index
    %2 = vector.load %arg7[%c0_1, %c0_2] : memref<16x128xf32, #tpu.memory_space<vmem>>, vector<16x128xf32>
    tpu.vector_store %arg7[%c0_1, %c0_2], %1 {strides = array<i32>} : memref<16x128xf32, #tpu.memory_space<vmem>>, vector<16x128xf32>,
    %c0_3 = arith.constant 0 : index
    %c0_4 = arith.constant 0 : index
    %3 = vector.load %arg0[%c0_3, %c0_4] : memref<16x16xf32, #tpu.memory_space<vmem>>, vector<16x16xf32>
    %c0_5 = arith.constant 0 : index
    %c0_6 = arith.constant 0 : index
    %4 = vector.load %arg3[%c0_5, %c0_6] : memref<816x32xf32, #tpu.memory_space<vmem>>, vector<16x32xf32>
    %cst_7 = arith.constant dense<0.000000e+00> : vector<16x32xf32>
    %5 = tpu.matmul %3, %4, %cst_7 {dimension_numbers = #tpu.dot_dimension_numbers<[1], [0], [0], [1], [0, 0, 1, 1], [], []>} : vector<16x16xf32>, vector<16x32xf32>, vector<16x32xf32> -> vector<16x32xf32>
    %c1 = arith.constant 1 : index
    %c0_8 = arith.constant 0 : index
    %6 = vector.load %arg5[%c1, %c0_8] : memref<8x256xf32, #tpu.memory_space<vmem>>, vector<1x32xf32>
    %7 = vector.broadcast %6 : vector<1x32xf32> to vector<16x32xf32>
    %8 = arith.addf %5, %7 : vector<16x32xf32>
    %c0_9 = arith.constant 0 : index
    %c0_10 = arith.constant 0 : index
    %9 = vector.load %arg7[%c0_9, %c0_10] : memref<16x128xf32, #tpu.memory_space<vmem>>, vector<16x32xf32>
    tpu.vector_store %arg7[%c0_9, %c0_10], %8 {strides = array<i32>} : memref<16x128xf32, #tpu.memory_space<vmem>>, vector<16x32xf32>,
    %c0_11 = arith.constant 0 : index
    %c0_12 = arith.constant 0 : index
    %10 = vector.load %arg7[%c0_11, %c0_12] : memref<16x128xf32, #tpu.memory_space<vmem>>, vector<16x128xf32>
    %c16 = arith.constant 16 : index
    %c0_13 = arith.constant 0 : index
    %11 = vector.load %arg3[%c16, %c0_13] : memref<816x32xf32, #tpu.memory_space<vmem>>, vector<128x32xf32>
    %cst_14 = arith.constant dense<0.000000e+00> : vector<16x32xf32>
    %12 = tpu.matmul %10, %11, %cst_14 {dimension_numbers = #tpu.dot_dimension_numbers<[1], [0], [0], [1], [0, 0, 1, 1], [], []>} : vector<16x128xf32>, vector<128x32xf32>, vector<16x32xf32> -> vector<16x32xf32>
    %cst_15 = arith.constant dense<0.000000e+00> : vector<16x32xf32>
    %13 = tpu.matmul %0, %12, %cst_15 {dimension_numbers = #tpu.dot_dimension_numbers<[1], [0], [0], [1], [0, 0, 1, 1], [], []>} : vector<16x16xf32>, vector<16x32xf32>, vector<16x32xf32> -> vector<16x32xf32>
    %c2 = arith.constant 2 : index
    %c0_16 = arith.constant 0 : index
    %14 = vector.load %arg5[%c2, %c0_16] : memref<8x256xf32, #tpu.memory_space<vmem>>, vector<1x32xf32>
    %15 = vector.broadcast %14 : vector<1x32xf32> to vector<16x32xf32>
    %16 = arith.addf %13, %15 : vector<16x32xf32>
    %cst_17 = arith.constant 0.000000e+00 : f32
    %17 = vector.broadcast %cst_17 : f32 to vector<16x32xf32>
    %18 = arith.maximumf %16, %17 : vector<16x32xf32>
    %c0_18 = arith.constant 0 : index
    %c32 = arith.constant 32 : index
    %19 = vector.load %arg7[%c0_18, %c32] : memref<16x128xf32, #tpu.memory_space<vmem>>, vector<16x32xf32>
    tpu.vector_store %arg7[%c0_18, %c32], %18 {strides = array<i32>} : memref<16x128xf32, #tpu.memory_space<vmem>>, vector<16x32xf32>,
    %c0_19 = arith.constant 0 : index
    %c0_20 = arith.constant 0 : index
    %20 = vector.load %arg7[%c0_19, %c0_20] : memref<16x128xf32, #tpu.memory_space<vmem>>, vector<16x128xf32>
    %c144 = arith.constant 144 : index
    %c0_21 = arith.constant 0 : index
    %21 = vector.load %arg3[%c144, %c0_21] : memref<816x32xf32, #tpu.memory_space<vmem>>, vector<128x32xf32>
    %cst_22 = arith.constant dense<0.000000e+00> : vector<16x32xf32>
    %22 = tpu.matmul %20, %21, %cst_22 {dimension_numbers = #tpu.dot_dimension_numbers<[1], [0], [0], [1], [0, 0, 1, 1], [], []>} : vector<16x128xf32>, vector<128x32xf32>, vector<16x32xf32> -> vector<16x32xf32>
    %cst_23 = arith.constant dense<0.000000e+00> : vector<16x32xf32>
    %23 = tpu.matmul %0, %22, %cst_23 {dimension_numbers = #tpu.dot_dimension_numbers<[1], [0], [0], [1], [0, 0, 1, 1], [], []>} : vector<16x16xf32>, vector<16x32xf32>, vector<16x32xf32> -> vector<16x32xf32>
    %c3 = arith.constant 3 : index
    %c0_24 = arith.constant 0 : index
    %24 = vector.load %arg5[%c3, %c0_24] : memref<8x256xf32, #tpu.memory_space<vmem>>, vector<1x32xf32>
    %25 = vector.broadcast %24 : vector<1x32xf32> to vector<16x32xf32>
    %26 = arith.addf %23, %25 : vector<16x32xf32>
    %cst_25 = arith.constant 0.000000e+00 : f32
    %27 = vector.broadcast %cst_25 : f32 to vector<16x32xf32>
    %28 = arith.maximumf %26, %27 : vector<16x32xf32>
    %c0_26 = arith.constant 0 : index
    %c64 = arith.constant 64 : index
    %29 = vector.load %arg7[%c0_26, %c64] : memref<16x128xf32, #tpu.memory_space<vmem>>, vector<16x32xf32>
    tpu.vector_store %arg7[%c0_26, %c64], %28 {strides = array<i32>} : memref<16x128xf32, #tpu.memory_space<vmem>>, vector<16x32xf32>,
    %c0_27 = arith.constant 0 : index
    %c0_28 = arith.constant 0 : index
    %30 = vector.load %arg7[%c0_27, %c0_28] : memref<16x128xf32, #tpu.memory_space<vmem>>, vector<16x128xf32>
    %c272 = arith.constant 272 : index
    %c0_29 = arith.constant 0 : index
    %31 = vector.load %arg3[%c272, %c0_29] : memref<816x32xf32, #tpu.memory_space<vmem>>, vector<128x32xf32>
    %cst_30 = arith.constant dense<0.000000e+00> : vector<16x32xf32>
    %32 = tpu.matmul %30, %31, %cst_30 {dimension_numbers = #tpu.dot_dimension_numbers<[1], [0], [0], [1], [0, 0, 1, 1], [], []>} : vector<16x128xf32>, vector<128x32xf32>, vector<16x32xf32> -> vector<16x32xf32>
    %cst_31 = arith.constant dense<0.000000e+00> : vector<16x32xf32>
    %33 = tpu.matmul %0, %32, %cst_31 {dimension_numbers = #tpu.dot_dimension_numbers<[1], [0], [0], [1], [0, 0, 1, 1], [], []>} : vector<16x16xf32>, vector<16x32xf32>, vector<16x32xf32> -> vector<16x32xf32>
    %c4 = arith.constant 4 : index
    %c0_32 = arith.constant 0 : index
    %34 = vector.load %arg5[%c4, %c0_32] : memref<8x256xf32, #tpu.memory_space<vmem>>, vector<1x32xf32>
    %35 = vector.broadcast %34 : vector<1x32xf32> to vector<16x32xf32>
    %36 = arith.addf %33, %35 : vector<16x32xf32>
    %cst_33 = arith.constant 0.000000e+00 : f32
    %37 = vector.broadcast %cst_33 : f32 to vector<16x32xf32>
    %38 = arith.maximumf %36, %37 : vector<16x32xf32>
    %c0_34 = arith.constant 0 : index
    %c96 = arith.constant 96 : index
    %39 = vector.load %arg7[%c0_34, %c96] : memref<16x128xf32, #tpu.memory_space<vmem>>, vector<16x32xf32>
    tpu.vector_store %arg7[%c0_34, %c96], %38 {strides = array<i32>} : memref<16x128xf32, #tpu.memory_space<vmem>>, vector<16x32xf32>,
    %c0_35 = arith.constant 0 : index
    %c0_36 = arith.constant 0 : index
    %40 = vector.load %arg2[%c0_35, %c0_36] : memref<8x16xf32, #tpu.memory_space<vmem>>, vector<8x16xf32>
    %c0_37 = arith.constant 0 : index
    %c0_38 = arith.constant 0 : index
    %41 = vector.load %arg7[%c0_37, %c0_38] : memref<16x128xf32, #tpu.memory_space<vmem>>, vector<16x128xf32>
    %cst_39 = arith.constant dense<0.000000e+00> : vector<8x128xf32>
    %42 = tpu.matmul %40, %41, %cst_39 {dimension_numbers = #tpu.dot_dimension_numbers<[1], [0], [0], [1], [0, 0, 1, 1], [], []>} : vector<8x16xf32>, vector<16x128xf32>, vector<8x128xf32> -> vector<8x128xf32>
    %c400 = arith.constant 400 : index
    %c0_40 = arith.constant 0 : index
    %43 = vector.load %arg3[%c400, %c0_40] : memref<816x32xf32, #tpu.memory_space<vmem>>, vector<128x32xf32>
    %cst_41 = arith.constant dense<0.000000e+00> : vector<8x32xf32>
    %44 = tpu.matmul %42, %43, %cst_41 {dimension_numbers = #tpu.dot_dimension_numbers<[1], [0], [0], [1], [0, 0, 1, 1], [], []>} : vector<8x128xf32>, vector<128x32xf32>, vector<8x32xf32> -> vector<8x32xf32>
    %c5 = arith.constant 5 : index
    %c0_42 = arith.constant 0 : index
    %45 = vector.load %arg5[%c5, %c0_42] : memref<8x256xf32, #tpu.memory_space<vmem>>, vector<1x32xf32>
    %46 = vector.broadcast %45 : vector<1x32xf32> to vector<8x32xf32>
    %47 = arith.addf %44, %46 : vector<8x32xf32>
    %cst_43 = arith.constant 0.000000e+00 : f32
    %48 = vector.broadcast %cst_43 : f32 to vector<8x32xf32>
    %49 = arith.cmpf ogt, %47, %48 : vector<8x32xf32>
    %cst_44 = arith.constant 1.000000e-01 : f32
    %50 = vector.broadcast %cst_44 : f32 to vector<8x32xf32>
    %51 = arith.mulf %50, %47 : vector<8x32xf32>
    %52 = arith.select %49, %47, %51 : vector<8x32xi1>, vector<8x32xf32>
    %c528 = arith.constant 528 : index
    %c0_45 = arith.constant 0 : index
    %53 = vector.load %arg3[%c528, %c0_45] : memref<816x32xf32, #tpu.memory_space<vmem>>, vector<32x32xf32>
    %cst_46 = arith.constant dense<0.000000e+00> : vector<8x32xf32>
    %54 = tpu.matmul %52, %53, %cst_46 {dimension_numbers = #tpu.dot_dimension_numbers<[1], [0], [0], [1], [0, 0, 1, 1], [], []>} : vector<8x32xf32>, vector<32x32xf32>, vector<8x32xf32> -> vector<8x32xf32>
    %c6 = arith.constant 6 : index
    %c0_47 = arith.constant 0 : index
    %55 = vector.load %arg5[%c6, %c0_47] : memref<8x256xf32, #tpu.memory_space<vmem>>, vector<1x32xf32>
    %56 = vector.broadcast %55 : vector<1x32xf32> to vector<8x32xf32>
    %57 = arith.addf %54, %56 : vector<8x32xf32>
    %cst_48 = arith.constant 0.000000e+00 : f32
    %58 = vector.broadcast %cst_48 : f32 to vector<8x32xf32>
    %59 = arith.maximumf %57, %58 : vector<8x32xf32>
    %c0_49 = arith.constant 0 : index
    %c0_50 = arith.constant 0 : index
    %60 = vector.load %arg4[%c0_49, %c0_50] : memref<32x256xf32, #tpu.memory_space<vmem>>, vector<32x256xf32>
    %cst_51 = arith.constant dense<0.000000e+00> : vector<8x256xf32>
    %61 = tpu.matmul %59, %60, %cst_51 {dimension_numbers = #tpu.dot_dimension_numbers<[1], [0], [0], [1], [0, 0, 1, 1], [], []>} : vector<8x32xf32>, vector<32x256xf32>, vector<8x256xf32> -> vector<8x256xf32>
    %c0_52 = arith.constant 0 : index
    %c0_53 = arith.constant 0 : index
    %62 = vector.load %arg5[%c0_52, %c0_53] : memref<8x256xf32, #tpu.memory_space<vmem>>, vector<1x256xf32>
    %63 = vector.broadcast %62 : vector<1x256xf32> to vector<8x256xf32>
    %64 = arith.addf %61, %63 : vector<8x256xf32>
    %cst_54 = arith.constant 0.000000e+00 : f32
    %65 = vector.broadcast %cst_54 : f32 to vector<8x256xf32>
    %66 = arith.maximumf %64, %65 : vector<8x256xf32>
    %c560 = arith.constant 560 : index
    %c0_55 = arith.constant 0 : index
    %67 = vector.load %arg3[%c560, %c0_55] : memref<816x32xf32, #tpu.memory_space<vmem>>, vector<256x32xf32>
    %cst_56 = arith.constant dense<0.000000e+00> : vector<8x32xf32>
    %68 = tpu.matmul %66, %67, %cst_56 {dimension_numbers = #tpu.dot_dimension_numbers<[1], [0], [0], [1], [0, 0, 1, 1], [], []>} : vector<8x256xf32>, vector<256x32xf32>, vector<8x32xf32> -> vector<8x32xf32>
    %c7 = arith.constant 7 : index
    %c0_57 = arith.constant 0 : index
    %69 = vector.load %arg5[%c7, %c0_57] : memref<8x256xf32, #tpu.memory_space<vmem>>, vector<1x32xf32>
    %70 = vector.broadcast %69 : vector<1x32xf32> to vector<8x32xf32>
    %71 = arith.addf %68, %70 : vector<8x32xf32>
    %c0_58 = arith.constant 0 : index
    %c0_59 = arith.constant 0 : index
    %72 = vector.load %arg6[%c0_58, %c0_59] : memref<8x32xf32, #tpu.memory_space<vmem>>, vector<8x32xf32>
    tpu.vector_store %arg6[%c0_58, %c0_59], %71 {strides = array<i32>} : memref<8x32xf32, #tpu.memory_space<vmem>>, vector<8x32xf32>,
    return
  }
}

</mosaic_0001>

<bundles_post_ra>
// kernel: tpu_custom_call.1
= control target key start
LH: loop header
LB: loop body
LE: loop exit
PB: predicated region body
PF: predicated region fallthrough
CT: control target
= control target key end

     0   :  { %vm33_vm0 = vcmask 130048   ;;  %v593_v3 = vmov 0.0   ;;  %s1032_s0 = inlined_call_operand.vmem [shape: f32[16,16], index: 0, kind: input, shape index: {}]   ;;  %s1033_s1 = inlined_call_operand.vmem [shape: f32[16,16], index: 1, kind: input, shape index: {}]   ;;  %s1034_s2 = inlined_call_operand.vmem [shape: f32[8,16], index: 2, kind: input, shape index: {}]   ;;  %s1035_s3 = inlined_call_operand.vmem [shape: f32[816,32], index: 3, kind: input, shape index: {}]   ;;  %s1036_s4 = inlined_call_operand.vmem [shape: f32[32,256], index: 4, kind: input, shape index: {}]   ;;  %s1037_s5 = inlined_call_operand.vmem [shape: f32[8,256], index: 5, kind: input, shape index: {}]   ;;  %s1038_s6 = inlined_call_operand.hbm [shape: f32[8,32], index: 6, kind: output, shape index: {}]  }
   0x1   :  { %v31_v0 = vld [vmem:[%s1035_s3 + $0x8] sm:$0xff]  ;;  %v30_v1 = vld [vmem:[%s1035_s3] sm:$0xff]  ;;  %26 = vst [vmem:[#allocation2] sm:$0xff] %v593_v3 }
   0x2   :  { %54 = vmatpush.msra.mxu1 %v31_v0  ;;  %v28_v2 = vld [vmem:[%s1032_s0] sm:$0xff]  ;;  %v83_v4 = vld [vmem:[%s1035_s3 + $0x88] sm:$0xff]  ;;  %27 = vst [vmem:[#allocation2 + $0x8] sm:$0xff] %v593_v3 }
   0x3   :  { %v82_v5 = vld [vmem:[%s1035_s3 + $0x80] sm:$0xff] }
   0x4   :  { %55 = vmatpush.msra.mxu1 %v30_v1 }
   0x5   :  { %550 = vmatmul.msk.f32.vlgmr.msra.gmra.mxu1 %vm33_vm0, %v28_v2 }
   0x6   :  { %84 = vmatpush.msrb.mxu1 %v83_v4 }
   0x7   :  { %11 = vsyncpa [#allocation4], 0  ;;  %v81_v6 = vld [vmem:[%s1035_s3 + $0x78] sm:$0xff]  ;;  %v80_v7 = vld [vmem:[%s1035_s3 + $0x70] sm:$0xff]  ;;  %vm63_vm1 = vcmask 261120   ;;  %s594_s18 = smov 32  }
   0x8   :  { %85 = vmatpush.msrb.mxu1 %v82_v5  ;;  %v29_v8 = vld [vmem:[%s1032_s0 + $0x8] sm:$0xff]  ;;  %v78_v10 = vld [vmem:[%s1035_s3 + $0x60] sm:$0xff]  ;;  %v77_v11 = vld [vmem:[%s1035_s3 + $0x58] sm:$0xff]  ;;  %vm147_vm2 = vcmask 523520   ;;  %s595_s25 = smov 64   ;;  %vm225_vm3 = vcmask 785920  }
   0x9   :  { %v79_v9 = vld [vmem:[%s1035_s3 + $0x68] sm:$0xff]  ;;  %v76_v12 = vld [vmem:[%s1035_s3 + $0x50] sm:$0xff]  ;;  %v74_v14 = vld [vmem:[%s1035_s3 + $0x40] sm:$0xff]  ;;  %s596_s12 = smov 96   ;;  %vm303_vm4 = vcmask 1048320   ;;  %s541_s9 = sshll.u32 %s1038_s6, 4  ;;  %s542_s9 = int_to_ptr.hbm [resolvable:$true] %s541_s9 }
   0xa   :  { %86 = vmatpush.msrb.mxu1 %v81_v6  ;;  %v75_v13 = vld [vmem:[%s1035_s3 + $0x48] sm:$0xff]  ;;  %v73_v15 = vld [vmem:[%s1035_s3 + $0x38] sm:$0xff]  ;;  %v72_v16 = vld [vmem:[%s1035_s3 + $0x30] sm:$0xff] }
   0xb   :  { %v71_v17 = vld [vmem:[%s1035_s3 + $0x28] sm:$0xff]  ;;  %v70_v18 = vld [vmem:[%s1035_s3 + $0x20] sm:$0xff]  ;;  %v69_v19 = vld [vmem:[%s1035_s3 + $0x18] sm:$0xff] }
   0xc   :  { %87 = vmatpush.msrb.mxu1 %v80_v7  ;;  %v68_v20 = vld [vmem:[%s1035_s3 + $0x10] sm:$0xff]  ;;  %v32_v21 = vld [vmem:[%s1037_s5 + $0x1] ss:$0 sm:$0xff]  ;;  %v710_v31 = vld [vmem:[%s1033_s1 + $0x8] sm:$0xff] }
   0xd   :  { %551 = vmatmul.msk.f32.gmra.mxu1 %vm33_vm0, %v29_v8  ;;  %v703_v30 = vld [vmem:[%s1033_s1] sm:$0xff]  ;;  %v167_v32 = vld [vmem:[%s1035_s3 + $0x108] sm:$0xff]  ;;  %v165_v34 = vld [vmem:[%s1035_s3 + $0xf8] sm:$0xff] }
   0xe   :  { %88 = vmatpush.msrb.mxu1 %v79_v9  ;;  %v166_v33 = vld [vmem:[%s1035_s3 + $0x100] sm:$0xff]  ;;  %168 = vmatpush.msra.mxu3 %v167_v32  ;;  %v164_v35 = vld [vmem:[%s1035_s3 + $0xf0] sm:$0xff]  ;;  %v163_v36 = vld [vmem:[%s1035_s3 + $0xe8] sm:$0xff] }
   0xf   :  { %v162_v37 = vld [vmem:[%s1035_s3 + $0xe0] sm:$0xff]  ;;  %v161_v38 = vld [vmem:[%s1035_s3 + $0xd8] sm:$0xff]  ;;  %v160_v39 = vld [vmem:[%s1035_s3 + $0xd0] sm:$0xff] }
  0x10   :  { %89 = vmatpush.msrb.mxu1 %v78_v10  ;;  %169 = vmatpush.msra.mxu3 %v166_v33  ;;  %v159_v40 = vld [vmem:[%s1035_s3 + $0xc8] sm:$0xff]  ;;  %v158_v41 = vld [vmem:[%s1035_s3 + $0xc0] sm:$0xff]  ;;  %v157_v43 = vld [vmem:[%s1035_s3 + $0xb8] sm:$0xff] }
  0x11   :  { %v107_v42 = vld [vmem:[%s1037_s5 + $0x2] ss:$0 sm:$0xff]  ;;  %v156_v46 = vld [vmem:[%s1035_s3 + $0xb0] sm:$0xff]  ;;  %v155_v51 = vld [vmem:[%s1035_s3 + $0xa8] sm:$0xff] }
  0x12   :  { %90 = vmatpush.msrb.mxu1 %v77_v11  ;;  %170 = vmatpush.msra.mxu3 %v165_v34  ;;  %v154_v52 = vld [vmem:[%s1035_s3 + $0xa0] sm:$0xff]  ;;  %v153_v53 = vld [vmem:[%s1035_s3 + $0x98] sm:$0xff]  ;;  %v152_v54 = vld [vmem:[%s1035_s3 + $0x90] sm:$0xff] }
  0x13   :  { %v245_v61 = vld [vmem:[%s1035_s3 + $0x188] sm:$0xff]  ;;  %v244_v62 = vld [vmem:[%s1035_s3 + $0x180] sm:$0xff]  ;;  %v243_v63 = vld [vmem:[%s1035_s3 + $0x178] sm:$0xff] }
  0x14   :  { %91 = vmatpush.msrb.mxu1 %v76_v12  ;;  %171 = vmatpush.msra.mxu3 %v164_v35  ;;  %v242_v0 = vld [vmem:[%s1035_s3 + $0x170] sm:$0xff]  ;;  %v241_v1 = vld [vmem:[%s1035_s3 + $0x168] sm:$0xff]  ;;  %v240_v2 = vld [vmem:[%s1035_s3 + $0x160] sm:$0xff] }
  0x15   :  { %v239_v3 = vld [vmem:[%s1035_s3 + $0x158] sm:$0xff]  ;;  %v238_v4 = vld [vmem:[%s1035_s3 + $0x150] sm:$0xff]  ;;  %v237_v5 = vld [vmem:[%s1035_s3 + $0x148] sm:$0xff] }
  0x16   :  { %92 = vmatpush.msrb.mxu1 %v75_v13  ;;  %172 = vmatpush.msra.mxu3 %v163_v36  ;;  %v236_v6 = vld [vmem:[%s1035_s3 + $0x140] sm:$0xff]  ;;  %v235_v8 = vld [vmem:[%s1035_s3 + $0x138] sm:$0xff]  ;;  %v234_v11 = vld [vmem:[%s1035_s3 + $0x130] sm:$0xff] }
  0x17   :  { %v191_v7 = vld [vmem:[%s1037_s5 + $0x3] ss:$0 sm:$0xff]  ;;  %v345_v35 = vld [vmem:[%s1035_s3 + $0x1f8] sm:$0xff]  ;;  %v344_v36 = vld [vmem:[%s1035_s3 + $0x1f0] sm:$0xff] }
  0x18   :  { %93 = vmatpush.msrb.mxu1 %v74_v14  ;;  %173 = vmatpush.msra.mxu3 %v162_v37  ;;  %v343_v37 = vld [vmem:[%s1035_s3 + $0x1e8] sm:$0xff] }
  0x1a   :  { %94 = vmatpush.msrb.mxu1 %v73_v15  ;;  %174 = vmatpush.msra.mxu3 %v161_v38  ;;  %v342_v38 = vld [vmem:[%s1035_s3 + $0x1e0] sm:$0xff] }
  0x1c   :  { %95 = vmatpush.msrb.mxu1 %v72_v16  ;;  %175 = vmatpush.msra.mxu3 %v160_v39  ;;  %v233_v16 = vld [vmem:[%s1035_s3 + $0x128] sm:$0xff]  ;;  %v341_v39 = vld [vmem:[%s1035_s3 + $0x1d8] sm:$0xff] }
  0x1e   :  { %96 = vmatpush.msrb.mxu1 %v71_v17  ;;  %176 = vmatpush.msra.mxu3 %v159_v40  ;;  %v232_v17 = vld [vmem:[%s1035_s3 + $0x120] sm:$0xff]  ;;  %v340_v40 = vld [vmem:[%s1035_s3 + $0x1d0] sm:$0xff] }
  0x20   :  { %97 = vmatpush.msrb.mxu1 %v70_v18  ;;  %177 = vmatpush.msra.mxu3 %v158_v41  ;;  %v231_v18 = vld [vmem:[%s1035_s3 + $0x118] sm:$0xff] }
  0x22   :  { %98 = vmatpush.msrb.mxu1 %v69_v19  ;;  %178 = vmatpush.msra.mxu3 %v157_v43  ;;  %v230_v19 = vld [vmem:[%s1035_s3 + $0x110] sm:$0xff]  ;;  %v338_v43 = vld [vmem:[%s1035_s3 + $0x1c0] sm:$0xff] }
  0x24   :  { %99 = vmatpush.msrb.mxu1 %v68_v20  ;;  %179 = vmatpush.msra.mxu3 %v156_v46 }
  0x26   :  { %180 = vmatpush.msra.mxu3 %v155_v51  ;;  %v306_v51 = vld [vmem:[%s1034_s2] sm:$0xff] }
  0x28   :  { %181 = vmatpush.msra.mxu3 %v154_v52 }
  0x2a   :  { %182 = vmatpush.msra.mxu3 %v153_v53  ;;  %v332_v53 = vld [vmem:[%s1035_s3 + $0x190] sm:$0xff] }
  0x2c   :  { %183 = vmatpush.msra.mxu3 %v152_v54  ;;  %v375_v54 = vld [vmem:[%s1035_s3 + $0x228] sm:$0xff] }
  0x82   :  { %v57_v22 = vpop.f32.mrf.mxu1 }
  0x83   :  { %v58_v23 = vadd.f32 %v57_v22, %v32_v21 }
  0x85   :  { %64 = vst.msk [vmem:[#allocation2] sm:$0xff] %vm63_vm1, %v58_v23 }
  0x8a   :  { %v60_v24 = vpop.f32.mrf.mxu1 }
  0x8b   :  { %v61_v25 = vadd.f32 %v60_v24, %v32_v21 }
  0x8c   :  { %v66_v26 = vld [vmem:[#allocation2] sm:$0xff] }
  0x8d   :  { %65 = vst.msk [vmem:[#allocation2 + $0x8] sm:$0xff] %vm63_vm1, %v61_v25  ;;  %100 = vmatmul.f32.vlgmr.msrb.gmra.mxu1 %v66_v26 }
  0x94   :  { %v67_v27 = vld [vmem:[#allocation2 + $0x8] sm:$0xff] }
  0x95   :  { %103 = vmatmul.f32.gmra.mxu1 %v67_v27  ;;  %v269_v27 = vld [vmem:[%s1037_s5 + $0x4] ss:$0 sm:$0xff] }
 0x10a   :  { %v101_v28 = vpop.f32.mrf.mxu1 }
 0x112   :  { %v104_v29 = vpop.f32.mrf.mxu1 }
 0x113   :  { %128 = vmatpush.msra.mxu2 %v104_v29 }
 0x115   :  { %129 = vmatpush.msra.mxu2 %v101_v28 }
 0x116   :  { %552 = vmatmul.msk.f32.vlgmr.msra.gmra.mxu2 %vm33_vm0, %v703_v30 }
 0x117   :  { %246 = vmatpush.msrb.mxu2 %v245_v61 }
 0x119   :  { %247 = vmatpush.msrb.mxu2 %v244_v62 }
 0x11b   :  { %248 = vmatpush.msrb.mxu2 %v243_v63 }
 0x11d   :  { %249 = vmatpush.msrb.mxu2 %v242_v0 }
 0x11e   :  { %553 = vmatmul.msk.f32.gmra.mxu2 %vm33_vm0, %v710_v31 }
 0x11f   :  { %250 = vmatpush.msrb.mxu2 %v241_v1  ;;  %v405_v1 = vld [vmem:[%s1036_s4 + $0x20] sm:$0xff] }
 0x121   :  { %251 = vmatpush.msrb.mxu2 %v240_v2  ;;  %v403_v2 = vld [vmem:[%s1036_s4 + $0x10] sm:$0xff] }
 0x123   :  { %252 = vmatpush.msrb.mxu2 %v239_v3  ;;  %v401_v3 = vld [vmem:[%s1036_s4] sm:$0xff] }
 0x125   :  { %253 = vmatpush.msrb.mxu2 %v238_v4  ;;  %v408_v4 = vld [vmem:[%s1036_s4 + $0x38] sm:$0xff] }
 0x127   :  { %254 = vmatpush.msrb.mxu2 %v237_v5  ;;  %v406_v5 = vld [vmem:[%s1036_s4 + $0x28] sm:$0xff] }
 0x129   :  { %255 = vmatpush.msrb.mxu2 %v236_v6  ;;  %v404_v6 = vld [vmem:[%s1036_s4 + $0x18] sm:$0xff] }
 0x12b   :  { %256 = vmatpush.msrb.mxu2 %v235_v8  ;;  %v491_v8 = vld [vmem:[%s1035_s3 + $0x328] sm:$0xff] }
 0x12d   :  { %257 = vmatpush.msrb.mxu2 %v234_v11  ;;  %v474_v11 = vld [vmem:[%s1035_s3 + $0x2a0] sm:$0xff] }
 0x12f   :  { %258 = vmatpush.msrb.mxu2 %v233_v16  ;;  %v487_v16 = vld [vmem:[%s1035_s3 + $0x308] sm:$0xff] }
 0x131   :  { %259 = vmatpush.msrb.mxu2 %v232_v17  ;;  %v471_v17 = vld [vmem:[%s1035_s3 + $0x288] sm:$0xff] }
 0x133   :  { %260 = vmatpush.msrb.mxu2 %v231_v18  ;;  %v486_v18 = vld [vmem:[%s1035_s3 + $0x300] sm:$0xff] }
 0x135   :  { %261 = vmatpush.msrb.mxu2 %v230_v19  ;;  %v470_v19 = vld [vmem:[%s1035_s3 + $0x280] sm:$0xff] }
 0x137   :  { %513 = vmatpush.msra.mxu2 %v491_v8 }
 0x199   :  { %v131_v44 = vpop.f32.mrf.mxu2 }
 0x19a   :  { %v132_v45 = vadd.f32 %v131_v44, %v107_v42  ;;  %v337_v44 = vld [vmem:[%s1035_s3 + $0x1b8] sm:$0xff] }
 0x19c   :  { %v137_v47 = vmax.f32 %v132_v45, 0.0  ;;  %v336_v45 = vld [vmem:[%s1035_s3 + $0x1b0] sm:$0xff] }
 0x19e   :  { %141 = vrot.lane.b32.xlu0 %v137_v47, %s594_s18 }
 0x1a1   :  { %v134_v48 = vpop.f32.mrf.mxu2 }
 0x1a2   :  { %v135_v49 = vadd.f32 %v134_v48, %v107_v42  ;;  %v339_v42 = vld [vmem:[%s1035_s3 + $0x1c8] sm:$0xff] }
 0x1a3   :  { %v335_v48 = vld [vmem:[%s1035_s3 + $0x1a8] sm:$0xff] }
 0x1a4   :  { %v138_v50 = vmax.f32 %v135_v49, 0.0  ;;  %v334_v49 = vld [vmem:[%s1035_s3 + $0x1a0] sm:$0xff] }
 0x1a6   :  { %143 = vrot.lane.b32.xlu0 %v138_v50, %s594_s18  ;;  %v333_v50 = vld [vmem:[%s1035_s3 + $0x198] sm:$0xff] }
 0x210   :  { %v142_v55 = vpop.permute.xlu0 %141 }
 0x211   :  { %148 = vst.msk [vmem:[#allocation2] sm:$0xff] %vm147_vm2, %v142_v55 }
 0x218   :  { %v144_v56 = vpop.permute.xlu0 %143  ;;  %v150_v57 = vld [vmem:[#allocation2] sm:$0xff] }
 0x219   :  { %149 = vst.msk [vmem:[#allocation2 + $0x8] sm:$0xff] %vm147_vm2, %v144_v56  ;;  %184 = vmatmul.f32.vlgmr.msra.gmra.mxu3 %v150_v57  ;;  %v374_v56 = vld [vmem:[%s1035_s3 + $0x220] sm:$0xff]  ;;  %v373_v57 = vld [vmem:[%s1035_s3 + $0x218] sm:$0xff] }
 0x220   :  { %v151_v58 = vld [vmem:[#allocation2 + $0x8] sm:$0xff] }
 0x221   :  { %187 = vmatmul.f32.gmra.mxu3 %v151_v58  ;;  %v372_v58 = vld [vmem:[%s1035_s3 + $0x210] sm:$0xff] }
 0x29c   :  { %v185_v59 = vpop.f32.mrf.mxu3 }
 0x2a4   :  { %v188_v60 = vpop.f32.mrf.mxu3 }
 0x2a5   :  { %206 = vmatpush.msra.mxu0 %v188_v60  ;;  %v348_v60 = vld [vmem:[%s1037_s5 + $0x5] ss:$0 sm:$0xff] }
 0x2a7   :  { %207 = vmatpush.msra.mxu0 %v185_v59  ;;  %v407_v59 = vld [vmem:[%s1036_s4 + $0x30] sm:$0xff] }
 0x2a8   :  { %554 = vmatmul.msk.f32.vlgmr.msra.gmra.mxu0 %vm33_vm0, %v703_v30 }
 0x2b0   :  { %555 = vmatmul.msk.f32.gmra.mxu0 %vm33_vm0, %v710_v31 }
 0x325   :  { %v209_v9 = vpop.f32.mrf.mxu0 }
 0x326   :  { %v210_v10 = vadd.f32 %v209_v9, %v191_v7  ;;  %v490_v9 = vld [vmem:[%s1035_s3 + $0x320] sm:$0xff] }
 0x327   :  { %514 = vmatpush.msra.mxu2 %v490_v9 }
 0x328   :  { %v215_v12 = vmax.f32 %v210_v10, 0.0  ;;  %v475_v10 = vld [vmem:[%s1035_s3 + $0x2a8] sm:$0xff] }
 0x32a   :  { %219 = vrot.lane.b32.xlu1 %v215_v12, %s595_s25  ;;  %v489_v12 = vld [vmem:[%s1035_s3 + $0x318] sm:$0xff] }
 0x32b   :  { %515 = vmatpush.msra.mxu2 %v489_v12 }
 0x32d   :  { %v212_v13 = vpop.f32.mrf.mxu0 }
 0x32e   :  { %v213_v14 = vadd.f32 %v212_v13, %v191_v7  ;;  %v402_v7 = vld [vmem:[%s1036_s4 + $0x8] sm:$0xff]  ;;  %v473_v13 = vld [vmem:[%s1035_s3 + $0x298] sm:$0xff] }
 0x330   :  { %v216_v15 = vmax.f32 %v213_v14, 0.0  ;;  %v488_v14 = vld [vmem:[%s1035_s3 + $0x310] sm:$0xff] }
 0x331   :  { %516 = vmatpush.msra.mxu2 %v488_v14 }
 0x332   :  { %221 = vrot.lane.b32.xlu1 %v216_v15, %s595_s25  ;;  %v472_v15 = vld [vmem:[%s1035_s3 + $0x290] sm:$0xff] }
 0x333   :  { %517 = vmatpush.msra.mxu2 %v487_v16 }
 0x335   :  { %518 = vmatpush.msra.mxu2 %v486_v18 }
 0x39c   :  { %v220_v20 = vpop.permute.xlu1 %219 }
 0x39d   :  { %226 = vst.msk [vmem:[#allocation2] sm:$0xff] %vm225_vm3, %v220_v20  ;;  %v485_v20 = vld [vmem:[%s1035_s3 + $0x2f8] sm:$0xff] }
 0x39e   :  { %519 = vmatpush.msra.mxu2 %v485_v20 }
 0x3a4   :  { %v222_v21 = vpop.permute.xlu1 %221  ;;  %v228_v22 = vld [vmem:[#allocation2] sm:$0xff] }
 0x3a5   :  { %227 = vst.msk [vmem:[#allocation2 + $0x8] sm:$0xff] %vm225_vm3, %v222_v21  ;;  %262 = vmatmul.f32.vlgmr.msrb.gmra.mxu2 %v228_v22  ;;  %v469_v21 = vld [vmem:[%s1035_s3 + $0x278] sm:$0xff]  ;;  %v484_v22 = vld [vmem:[%s1035_s3 + $0x2f0] sm:$0xff] }
 0x3a6   :  { %520 = vmatpush.msra.mxu2 %v484_v22 }
 0x3ac   :  { %v229_v23 = vld [vmem:[#allocation2 + $0x8] sm:$0xff] }
 0x3ad   :  { %265 = vmatmul.f32.gmra.mxu2 %v229_v23  ;;  %v468_v23 = vld [vmem:[%s1035_s3 + $0x270] sm:$0xff] }
 0x428   :  { %v263_v24 = vpop.f32.mrf.mxu2 }
 0x430   :  { %v266_v25 = vpop.f32.mrf.mxu2 }
 0x431   :  { %284 = vmatpush.msrb.mxu0 %v266_v25  ;;  %v376_v25 = vld [vmem:[%s1037_s5 + $0x6] ss:$0 sm:$0xff] }
 0x433   :  { %285 = vmatpush.msrb.mxu0 %v263_v24  ;;  %v483_v24 = vld [vmem:[%s1035_s3 + $0x2e8] sm:$0xff] }
 0x434   :  { %556 = vmatmul.msk.f32.vlgmr.msrb.gmra.mxu0 %vm33_vm0, %v703_v30  ;;  %v347_v30 = vld [vmem:[%s1035_s3 + $0x208] sm:$0xff]  ;;  %521 = vmatpush.msra.mxu2 %v483_v24 }
 0x435   :  { %349 = vmatpush.msrb.mxu3 %v347_v30  ;;  %392 = vmatpush.msra.mxu0 %v375_v54  ;;  %v463_v30 = vld [vmem:[%s1035_s3 + $0x248] sm:$0xff] }
 0x437   :  { %393 = vmatpush.msra.mxu0 %v374_v56 }
 0x439   :  { %394 = vmatpush.msra.mxu0 %v373_v57 }
 0x43b   :  { %395 = vmatpush.msra.mxu0 %v372_v58 }
 0x43c   :  { %557 = vmatmul.msk.f32.gmra.mxu0 %vm33_vm0, %v710_v31  ;;  %v346_v31 = vld [vmem:[%s1035_s3 + $0x200] sm:$0xff] }
 0x43d   :  { %350 = vmatpush.msrb.mxu3 %v346_v31  ;;  %493 = vmatpush.msrb.mxu0 %v475_v10  ;;  %v482_v31 = vld [vmem:[%s1035_s3 + $0x2e0] sm:$0xff] }
 0x43e   :  { %522 = vmatpush.msra.mxu2 %v482_v31 }
 0x43f   :  { %351 = vmatpush.msrb.mxu3 %v345_v35  ;;  %494 = vmatpush.msrb.mxu0 %v474_v11  ;;  %v462_v35 = vld [vmem:[%s1035_s3 + $0x240] sm:$0xff] }
 0x441   :  { %352 = vmatpush.msrb.mxu3 %v344_v36  ;;  %495 = vmatpush.msrb.mxu0 %v473_v13  ;;  %v481_v36 = vld [vmem:[%s1035_s3 + $0x2d8] sm:$0xff] }
 0x442   :  { %523 = vmatpush.msra.mxu2 %v481_v36 }
 0x443   :  { %353 = vmatpush.msrb.mxu3 %v343_v37  ;;  %496 = vmatpush.msrb.mxu0 %v472_v15  ;;  %v461_v37 = vld [vmem:[%s1035_s3 + $0x238] sm:$0xff] }
 0x445   :  { %354 = vmatpush.msrb.mxu3 %v342_v38  ;;  %497 = vmatpush.msrb.mxu0 %v471_v17  ;;  %v480_v38 = vld [vmem:[%s1035_s3 + $0x2d0] sm:$0xff] }
 0x446   :  { %524 = vmatpush.msra.mxu2 %v480_v38 }
 0x447   :  { %355 = vmatpush.msrb.mxu3 %v341_v39  ;;  %498 = vmatpush.msrb.mxu0 %v470_v19  ;;  %v479_v39 = vld [vmem:[%s1035_s3 + $0x2c8] sm:$0xff] }
 0x448   :  { %525 = vmatpush.msra.mxu2 %v479_v39 }
 0x449   :  { %356 = vmatpush.msrb.mxu3 %v340_v40  ;;  %499 = vmatpush.msrb.mxu0 %v469_v21  ;;  %v460_v40 = vld [vmem:[%s1035_s3 + $0x230] sm:$0xff] }
 0x44b   :  { %357 = vmatpush.msrb.mxu3 %v339_v42  ;;  %500 = vmatpush.msrb.mxu0 %v468_v23  ;;  %v477_v42 = vld [vmem:[%s1035_s3 + $0x2b8] sm:$0xff] }
 0x44d   :  { %358 = vmatpush.msrb.mxu3 %v338_v43  ;;  %v476_v43 = vld [vmem:[%s1035_s3 + $0x2b0] sm:$0xff] }
 0x44f   :  { %359 = vmatpush.msrb.mxu3 %v337_v44  ;;  %v409_v44 = vld [vmem:[%s1037_s5] ss:$8 sm:$0x3] }
 0x451   :  { %360 = vmatpush.msrb.mxu3 %v336_v45  ;;  %v411_v45 = vperm.slane %v409_v44, 0 }
 0x453   :  { %361 = vmatpush.msrb.mxu3 %v335_v48 }
 0x455   :  { %362 = vmatpush.msrb.mxu3 %v334_v49  ;;  %v412_v49 = vperm.slane %v409_v44, 1 }
 0x457   :  { %363 = vmatpush.msrb.mxu3 %v333_v50 }
 0x459   :  { %364 = vmatpush.msrb.mxu3 %v332_v53  ;;  %v492_v53 = vld [vmem:[%s1037_s5 + $0x7] ss:$0 sm:$0xff] }
 0x4b1   :  { %v287_v26 = vpop.f32.mrf.mxu0 }
 0x4b2   :  { %v288_v33 = vadd.f32 %v287_v26, %v269_v27 }
 0x4b4   :  { %v293_v34 = vmax.f32 %v288_v33, 0.0  ;;  %v465_v33 = vld [vmem:[%s1035_s3 + $0x258] sm:$0xff] }
 0x4b9   :  { %v290_v28 = vpop.f32.mrf.mxu0 }
 0x4ba   :  { %v291_v29 = vadd.f32 %v290_v28, %v269_v27 }
 0x4bc   :  { %v294_v32 = vmax.f32 %v291_v29, 0.0  ;;  %v467_v29 = vld [vmem:[%s1035_s3 + $0x268] sm:$0xff] }
 0x4bd   :  { %501 = vmatpush.msrb.mxu0 %v467_v29 }
 0x4be   :  { %299 = vrot.lane.b32.xlu2 %v294_v32, %s596_s12  ;;  %v466_v32 = vld [vmem:[%s1035_s3 + $0x260] sm:$0xff] }
 0x4bf   :  { %502 = vmatpush.msrb.mxu0 %v466_v32 }
 0x4c1   :  { %503 = vmatpush.msrb.mxu0 %v465_v33 }
 0x4c6   :  { %297 = vrot.lane.b32.xlu2 %v293_v34, %s596_s12  ;;  %v464_v34 = vld [vmem:[%s1035_s3 + $0x250] sm:$0xff] }
 0x4c7   :  { %504 = vmatpush.msrb.mxu0 %v464_v34 }
 0x4c9   :  { %505 = vmatpush.msrb.mxu0 %v463_v30 }
 0x4cb   :  { %506 = vmatpush.msrb.mxu0 %v462_v35 }
 0x4cd   :  { %507 = vmatpush.msrb.mxu0 %v461_v37 }
 0x4cf   :  { %508 = vmatpush.msrb.mxu0 %v460_v40 }
 0x518   :  { %v300_v41 = vpop.permute.xlu2 %299 }
 0x519   :  { %305 = vst.msk [vmem:[#allocation2 + $0x8] sm:$0xff] %vm303_vm4, %v300_v41  ;;  %v478_v41 = vld [vmem:[%s1035_s3 + $0x2c0] sm:$0xff]  ;;  %s597_s3 = smov [#allocation3]  }
 0x51a   :  { %526 = vmatpush.msra.mxu2 %v478_v41  ;;  %s539_s30 = sshll.u32 %s597_s3, 4  ;;  %s540_s30 = int_to_ptr.vmem [resolvable:$true] %s539_s30 }
 0x51c   :  { %527 = vmatpush.msra.mxu2 %v477_v42 }
 0x51e   :  { %528 = vmatpush.msra.mxu2 %v476_v43 }
 0x520   :  { %v298_v46 = vpop.permute.xlu2 %297  ;;  %v308_v47 = vld [vmem:[#allocation2 + $0x8] sm:$0xff] }
 0x521   :  { %304 = vst.msk [vmem:[#allocation2] sm:$0xff] %vm303_vm4, %v298_v46  ;;  %326 = vmatpush.msra.mxu1 %v308_v47 }
 0x528   :  { %v307_v52 = vld [vmem:[#allocation2] sm:$0xff] }
 0x529   :  { %327 = vmatpush.msra.mxu1 %v307_v52 }
 0x52a   :  { %558 = vmatmul.msk.f32.vlgmr.msra.gmra.mxu1 %vm33_vm0, %v306_v51 }
 0x52b   :  { %430 = vmatpush.msrb.mxu1 %v407_v59 }
 0x52d   :  { %431 = vmatpush.msrb.mxu1 %v405_v1 }
 0x52f   :  { %432 = vmatpush.msrb.mxu1 %v403_v2 }
 0x531   :  { %433 = vmatpush.msrb.mxu1 %v401_v3 }
 0x533   :  { %450 = vmatpush.msra.mxu1 %v408_v4 }
 0x535   :  { %451 = vmatpush.msra.mxu1 %v406_v5 }
 0x537   :  { %452 = vmatpush.msra.mxu1 %v404_v6 }
 0x539   :  { %453 = vmatpush.msra.mxu1 %v402_v7 }
 0x5a7   :  { %v329_v55 = vpop.f32.mrf.mxu1 }
 0x5a8   :  { %365 = vmatmul.f32.vlgmr.msrb.gmra.mxu3 %v329_v55 }
 0x62b   :  { %v366_v61 = vpop.f32.mrf.mxu3 }
 0x62c   :  { %v367_v62 = vadd.f32 %v366_v61, %v348_v60 }
 0x62e   :  { %vm369_vm5 = vcmp.gt.f32.partialorder %v367_v62, 0.0  ;;  %v370_v63 = vmul.f32 0.1, %v367_v62 }
 0x630   :  { %v371_v0 = vsel %vm369_vm5, %v367_v62, %v370_v63 }
 0x631   :  { %559 = vmatmul.msk.f32.vlgmr.msra.gmra.mxu0 %vm63_vm1, %v371_v0 }
 0x6ae   :  { %v397_v26 = vpop.f32.mrf.mxu0 }
 0x6af   :  { %v398_v27 = vadd.f32 %v397_v26, %v376_v25 }
 0x6b1   :  { %v400_v28 = vmax.f32 %v398_v27, 0.0 }
 0x6b3   :  { %560 = vmatmul.msk.f32.vlgmr.msrb.gmra.mxu1 %vm63_vm1, %v400_v28 }
 0x6bb   :  { %561 = vmatmul.msk.f32.vlgmr.msra.gmra.mxu1 %vm63_vm1, %v400_v28 }
 0x730   :  { %v435_v46 = vpop.f32.mrf.mxu1 }
 0x731   :  { %v436_v47 = vadd.f32 %v435_v46, %v411_v45 }
 0x733   :  { %v458_v48 = vmax.f32 %v436_v47, 0.0 }
 0x735   :  { %509 = vmatmul.f32.vlgmr.msrb.gmra.mxu0 %v458_v48 }
 0x738   :  { %v455_v50 = vpop.f32.mrf.mxu1 }
 0x739   :  { %v456_v51 = vadd.f32 %v455_v50, %v412_v49 }
 0x73b   :  { %v459_v52 = vmax.f32 %v456_v51, 0.0 }
 0x73d   :  { %529 = vmatmul.f32.vlgmr.msra.gmra.mxu2 %v459_v52 }
 0x7b2   :  { %v510_v54 = vpop.f32.mrf.mxu0 }
 0x7b3   :  { %v511_v55 = vadd.f32 %v510_v54, %v492_v53 }
 0x7c0   :  { %v530_v56 = vpop.f32.mrf.mxu2 }
 0x7c1   :  { %v531_v57 = vadd.f32 %v530_v56, %v511_v55 }
 0x7c3   :  { %533 = vst.msk [vmem:[#allocation3] sm:$0xff] %vm63_vm1, %v531_v57 }
 0x7c4   :  { %544 = dma.vmem_to_hbm [thread:$0]  %s540_s30, 128, %s542_s9, [#allocation4]  }
 0x7c5   :  { %591 = dma.done.wait [#allocation4], 128  }
 0x7c6   :  { %592 = vsyncadd [#allocation4], 4294967168 }
 0x7c7   :  { %549 = vsyncpa [#allocation4], 1 }

</bundles_post_ra>
